<compile_context>
chip_gen: v5e
topology: v5e:2x2
jax: 0.10.0
libtpu: 0.0.40
codegen_flags: <defaults>
</compile_context>

<pallas_src>
import numpy as np
import jax
import jax.numpy as jnp
from jax.experimental import pallas as pl
from jax.experimental.pallas import tpu as pltpu


# ----------------------------------------------------------------------------
# pass 1: hoisted combine_fc projections
# ----------------------------------------------------------------------------
def project_kernel(h_ref, w1a_ref, w1b_ref, b1_ref, p_ref, c_ref):
    """h_ref: (TS, D) bf16; w1a/w1b: (D, D) bf16; b1: (1, D) f32.
       p_ref/c_ref: (TS, D) bf16 outputs (anchor half / visible half + bias)."""
    h = h_ref[...]
    p = jnp.dot(h, w1a_ref[...], preferred_element_type=jnp.float32)
    c = jnp.dot(h, w1b_ref[...], preferred_element_type=jnp.float32) + b1_ref[...]
    p_ref[...] = p.astype(p_ref.dtype)
    c_ref[...] = c.astype(c_ref.dtype)


# ----------------------------------------------------------------------------
# pass 2: packed-triangle handshaking blocks + tag head
# ----------------------------------------------------------------------------
def handshake_tag_kernel(bi_ref, bj_ref, p_ref, c_ref, wf_ref, bf_ref, o_ref):
    """bi_ref/bj_ref: SMEM block tables (consumed by the index_maps).
       p_ref: (TI, D) bf16 anchor projections for this block's anchor tile
       c_ref: (TJ, D) bf16 visible projections (+bias) for this block's seq tile
       wf_ref: (D, T_pad) bf16, bf_ref: (1, T_pad) f32
       o_ref: (TI, TJ, T_pad) bf16 packed output block."""
    del bi_ref, bj_ref
    TI, D = p_ref.shape
    TJ = c_ref.shape[0]
    T_pad = o_ref.shape[-1]

    # f32 add + tanh (portable: v5e has no bf16 VPU/EUP); bf16 MXU operand.
    p = p_ref[...].astype(jnp.float32)                                   # (TI, D)
    c = c_ref[...].astype(jnp.float32)                                   # (TJ, D)
    z = jnp.tanh(p[:, None, :] + c[None, :, :])                          # (TI, TJ, D) f32
    zb = z.astype(jnp.bfloat16).reshape(TI * TJ, D)                      # MXU operand
    o = jnp.dot(zb, wf_ref[...], preferred_element_type=jnp.float32)     # (TI*TJ, T_pad)
    o = o + bf_ref[...]
    o_ref[...] = o.reshape(TI, TJ, T_pad).astype(o_ref.dtype)


# ----------------------------------------------------------------------------
# wrapper helpers
# ----------------------------------------------------------------------------
def _pick_tile(n, cap):
    """Largest divisor of n that is <= cap, preferring sublane-friendly multiples
    of 8.  Falls back to the full dimension (legal full-extent block)."""
    if n <= cap:
        return n
    best = None
    for t in range(min(cap, n), 0, -1):
        if n % t == 0:
            if t % 8 == 0:
                return t
            if best is None:
                best = t
    # No 8-multiple divisor <= cap: full-extent block (watch VMEM for odd S).
    return n


def _vmem_cap_bytes():
    """Physical VMEM of this generation (v5e/v6e: 128 MiB, v7x: 64 MiB)."""
    try:
        return int(pltpu.get_tpu_info().vmem_capacity_bytes)
    except Exception:
        return 64 << 20  # conservative default: fits every generation


def _vmem_limit_bytes(working_bytes, cap_bytes):
    lim = max(2 * working_bytes, 16 << 20)
    return int(min(lim, int(0.75 * cap_bytes)))


# ----------------------------------------------------------------------------
# forward
# ----------------------------------------------------------------------------
def tplinker_plus_forward(last_hidden_state, combine_w, combine_b, fc_w, fc_b):
    """last_hidden_state: (B, S, D) f32
       combine_w: (D, 2D), combine_b: (D,)   -- nn.Linear(2D, D)  (combine_fc)
       fc_w:      (T, D),  fc_b:      (T,)   -- nn.Linear(D, T)   (tag head)
       returns (outputs, sampled_tok_pair_indices=None)
       outputs: (B, S*(S+1)//2, T) f32 in PyTorch's handshaking concat order."""
    B, S, D = last_hidden_state.shape
    T = fc_w.shape[0]
    T_pad = ((T + 127) // 128) * 128  # lane-dense tag dim (multiple of 128)

    vmem_cap = _vmem_cap_bytes()

    # bf16 MXU operands; split the concat-linear into two right-multiplied halves.
    h_bf = last_hidden_state.astype(jnp.bfloat16)
    w1a = combine_w[:, :D].T.astype(jnp.bfloat16)      # acts on repeated anchor h_i
    w1b = combine_w[:, D:].T.astype(jnp.bfloat16)      # acts on visible h_j
    b1 = combine_b.astype(jnp.float32).reshape(1, D)
    wf = jnp.zeros((D, T_pad), jnp.bfloat16).at[:, :T].set(fc_w.T.astype(jnp.bfloat16))
    bf = jnp.zeros((1, T_pad), jnp.float32).at[:, :T].set(
        fc_b.astype(jnp.float32).reshape(1, T))

    # -------------------- pass 1: P = h @ W1a, C = h @ W1b + b1 --------------------
    TS = _pick_tile(S, 256)
    proj_work = (2 * TS * D * 2                      # h block, double-buffered
                 + 2 * 2 * D * D * 2 + 2 * D * 4     # weights + bias
                 + 2 * 2 * TS * D * 2                # two bf16 output blocks
                 + 2 * TS * D * 4)                   # f32 intermediates
    proj_cost = pl.CostEstimate(
        flops=int(4 * B * S * D * D),
        transcendentals=0,
        bytes_accessed=int(B * S * D * 2 * 3 + 2 * D * D * 2 + D * 4))
    P, C = pl.pallas_call(
        project_kernel,
        out_shape=(jax.ShapeDtypeStruct((B, S, D), jnp.bfloat16),
                   jax.ShapeDtypeStruct((B, S, D), jnp.bfloat16)),
        grid_spec=pltpu.PrefetchScalarGridSpec(
            num_scalar_prefetch=0,
            grid=(B, S // TS),
            in_specs=[
                pl.BlockSpec((None, TS, D), lambda b, s: (b, s, 0)),
                pl.BlockSpec((D, D), lambda b, s: (0, 0)),
                pl.BlockSpec((D, D), lambda b, s: (0, 0)),
                pl.BlockSpec((1, D), lambda b, s: (0, 0)),
            ],
            out_specs=[
                pl.BlockSpec((None, TS, D), lambda b, s: (b, s, 0)),
                pl.BlockSpec((None, TS, D), lambda b, s: (b, s, 0)),
            ]),
        compiler_params=pltpu.CompilerParams(
            dimension_semantics=("parallel", "parallel"),
            vmem_limit_bytes=_vmem_limit_bytes(proj_work, vmem_cap)),
        cost_estimate=proj_cost,
    )(h_bf, w1a, w1b, b1)

    # -------------------- pass 2: packed triangular pair blocks + tag head ---------
    # Anchor tile: 32 on 128-MiB VMEM parts (v5e/v6e), 16 on v7x (64 MiB).
    ti_cap = 32 if vmem_cap >= (96 << 20) else 16
    TI = _pick_tile(S, ti_cap)     # anchor tile
    TJ = _pick_tile(S, 128)        # visible-token tile
    n_i, n_j = S // TI, S // TJ

    # Packed-triangle block list: only blocks with at least one valid pair (j>=i).
    # Ordered jb-major / ib-fast so consecutive grid steps keep the big C tile
    # resident (only the small P tile is re-fetched).
    slot_tbl = np.full((n_i, n_j), -1, np.int32)
    blk_i_list, blk_j_list = [], []
    for jb in range(n_j):
        for ib in range(n_i):
            if jb * TJ + TJ - 1 >= ib * TI:
                slot_tbl[ib, jb] = len(blk_i_list)
                blk_i_list.append(ib)
                blk_j_list.append(jb)
    n_blk = len(blk_i_list)
    blk_i = jnp.asarray(np.asarray(blk_i_list, dtype=np.int32))
    blk_j = jnp.asarray(np.asarray(blk_j_list, dtype=np.int32))

    hs_work = (2 * (TI * D * 2 + TJ * D * 2)             # P/C blocks, double-buffered
               + 2 * TI * TJ * T_pad * 2                 # bf16 output block, double-buffered
               + 2 * (D * T_pad * 2 + T_pad * 4)         # wf / bias
               + TI * TJ * D * (4 + 2)                   # z (f32) + zb (bf16)
               + TI * TJ * T_pad * 4                     # o (f32) before store cast
               + (TI + TJ) * D * 4)                      # p/c upcasts
    hs_cost = pl.CostEstimate(
        flops=int(B * n_blk * TI * TJ * D * (2 * T_pad + 2)),
        transcendentals=int(B * n_blk * TI * TJ * D),
        bytes_accessed=int(B * n_blk * (TI + TJ) * D * 2
                           + D * T_pad * 2 + T_pad * 4
                           + B * n_blk * TI * TJ * T_pad * 2))
    packed = pl.pallas_call(
        handshake_tag_kernel,
        out_shape=jax.ShapeDtypeStruct((B, n_blk, TI, TJ, T_pad), jnp.bfloat16),
        grid_spec=pltpu.PrefetchScalarGridSpec(
            num_scalar_prefetch=2,
            grid=(B, n_blk),
            in_specs=[
                pl.BlockSpec((None, TI, D), lambda b, g, bi, bj: (b, bi[g], 0)),
                pl.BlockSpec((None, TJ, D), lambda b, g, bi, bj: (b, bj[g], 0)),
                pl.BlockSpec((D, T_pad), lambda b, g, bi, bj: (0, 0)),
                pl.BlockSpec((1, T_pad), lambda b, g, bi, bj: (0, 0)),
            ],
            out_specs=pl.BlockSpec((None, None, TI, TJ, T_pad),
                                   lambda b, g, bi, bj: (b, g, 0, 0, 0)),
        ),
        compiler_params=pltpu.CompilerParams(
            dimension_semantics=("parallel", "parallel"),
            vmem_limit_bytes=_vmem_limit_bytes(hs_work, vmem_cap)),
        cost_estimate=hs_cost,
    )(blk_i, blk_j, P, C, wf, bf)

    # Gather the valid pairs (j >= i, PyTorch row-major concat order) from the
    # packed block buffer and drop the lane padding on the tag dim.
    ii, jj = np.triu_indices(S)
    ib_idx = ii // TI
    jb_idx = jj // TJ
    slots = slot_tbl[ib_idx, jb_idx]
    assert (slots >= 0).all()
    flat = (slots.astype(np.int64) * (TI * TJ)
            + (ii % TI).astype(np.int64) * TJ + (jj % TJ)).astype(np.int32)
    flat = jnp.asarray(flat)
    packed_flat = packed.reshape(B, n_blk * TI * TJ, T_pad)
    outputs = packed_flat[:, flat, :T].astype(jnp.float32)   # (B, S*(S+1)//2, T)
    return outputs, None


# ----------------------------------------------------------------------------
# pure-JAX reference (PyTorch eval forward, shaking_type='cat')
# ----------------------------------------------------------------------------
def reference_forward(h, combine_w, combine_b, fc_w, fc_b, mxu_dtype=jnp.float32):
    """Same algorithm as HandshakingKernel + fc.  mxu_dtype=bfloat16 mirrors the
    kernel's MXU-operand rounding (f32 accumulation) for a tight comparison."""
    def q(x):
        return x.astype(mxu_dtype).astype(jnp.float32)
    B, S, D = h.shape
    hq, wq, fq = q(h), q(combine_w), q(fc_w)
    outs = []
    for ind in range(S):
        hidden_each_step = hq[:, ind, :]                     # (B, D)
        visible = hq[:, ind:, :]                             # (B, S-ind, D)
        repeat = jnp.repeat(hidden_each_step[:, None, :], S - ind, axis=1)
        cat = jnp.concatenate([repeat, visible], axis=-1)    # (B, S-ind, 2D)
        shaking = jnp.tanh(cat @ wq.T + combine_b)           # (B, S-ind, D)
        shaking = q(shaking)
        outs.append(shaking @ fq.T + fc_b)                   # (B, S-ind, T)
    return jnp.concatenate(outs, axis=1)


if __name__ == "__main__":
    B, S, D, T = 2, 8, 32, 16  # batch, seq_len, bert hidden_size, tag_size

    key = jax.random.PRNGKey(0)
    k_h, k_w1, k_b1, k_wf, k_bf = jax.random.split(key, 5)

    last_hidden_state = jax.random.normal(k_h, (B, S, D), jnp.float32)
    combine_w = 0.1 * jax.random.normal(k_w1, (D, 2 * D), jnp.float32)  # nn.Linear(2D, D).weight
    combine_b = 0.1 * jax.random.normal(k_b1, (D,), jnp.float32)        # nn.Linear(2D, D).bias
    fc_w = 0.1 * jax.random.normal(k_wf, (T, D), jnp.float32)           # nn.Linear(D, T).weight
    fc_b = 0.1 * jax.random.normal(k_bf, (T,), jnp.float32)             # nn.Linear(D, T).bias

    outputs, sampled_idx = tplinker_plus_forward(
        last_hidden_state, combine_w, combine_b, fc_w, fc_b)
    outputs = jax.block_until_ready(outputs)

    ref = reference_forward(last_hidden_state, combine_w, combine_b, fc_w, fc_b,
                            mxu_dtype=jnp.bfloat16)
    assert outputs.shape == (B, S * (S + 1) // 2, T), outputs.shape
    # bf16 storage of P/C and of the packed output adds ~1 extra bf16 ulp vs the
    # bf16-operand reference; tolerance widened accordingly (values are O(0.5)).
    max_err = float(jnp.max(jnp.abs(outputs - ref)))
    assert max_err < 3e-2, max_err

    print("KERNEL_OK")
</pallas_src>

<mosaic_0001>
module attributes {stable_mosaic.version = 11 : i64} {
  func.func @project_kernel(%arg0: i32, %arg1: i32, %arg2: memref<1x8x32xbf16, #tpu.memory_space<vmem>>, %arg3: memref<32x32xbf16, #tpu.memory_space<vmem>>, %arg4: memref<32x32xbf16, #tpu.memory_space<vmem>>, %arg5: memref<1x32xf32, #tpu.memory_space<vmem>>, %arg6: memref<1x8x32xbf16, #tpu.memory_space<vmem>>, %arg7: memref<1x8x32xbf16, #tpu.memory_space<vmem>>) attributes {dimension_semantics = [#tpu.dimension_semantics<parallel>, #tpu.dimension_semantics<parallel>], iteration_bounds = array<i64: 2, 1>, scalar_prefetch = 0 : i64, scratch_operands = 0 : i64, tpu.core_type = #tpu.core_type<tc>, window_params = [{transform_indices = @transform_0, window_bounds = array<i64: 1, 8, 32>}, {pipeline_mode = #tpu.pipeline_mode<synchronous>, transform_indices = @transform_1, window_bounds = array<i64: 32, 32>}, {pipeline_mode = #tpu.pipeline_mode<synchronous>, transform_indices = @transform_2, window_bounds = array<i64: 32, 32>}, {pipeline_mode = #tpu.pipeline_mode<synchronous>, transform_indices = @transform_3, window_bounds = array<i64: 1, 32>}, {transform_indices = @transform_4, window_bounds = array<i64: 1, 8, 32>}, {transform_indices = @transform_5, window_bounds = array<i64: 1, 8, 32>}]} {
    %c0 = arith.constant 0 : index
    %c0_0 = arith.constant 0 : index
    %c0_1 = arith.constant 0 : index
    %0 = vector.load %arg2[%c0, %c0_0, %c0_1] : memref<1x8x32xbf16, #tpu.memory_space<vmem>>, vector<1x8x32xbf16>
    %1 = vector.shape_cast %0 : vector<1x8x32xbf16> to vector<8x32xbf16>
    %c0_2 = arith.constant 0 : index
    %c0_3 = arith.constant 0 : index
    %2 = vector.load %arg3[%c0_2, %c0_3] : memref<32x32xbf16, #tpu.memory_space<vmem>>, vector<32x32xbf16>
    %cst = arith.constant dense<0.000000e+00> : vector<8x32xf32>
    %3 = tpu.matmul %1, %2, %cst {dimension_numbers = #tpu.dot_dimension_numbers<[1], [0], [0], [1], [0, 0, 1, 1], [], []>} : vector<8x32xbf16>, vector<32x32xbf16>, vector<8x32xf32> -> vector<8x32xf32>
    %c0_4 = arith.constant 0 : index
    %c0_5 = arith.constant 0 : index
    %4 = vector.load %arg4[%c0_4, %c0_5] : memref<32x32xbf16, #tpu.memory_space<vmem>>, vector<32x32xbf16>
    %cst_6 = arith.constant dense<0.000000e+00> : vector<8x32xf32>
    %5 = tpu.matmul %1, %4, %cst_6 {dimension_numbers = #tpu.dot_dimension_numbers<[1], [0], [0], [1], [0, 0, 1, 1], [], []>} : vector<8x32xbf16>, vector<32x32xbf16>, vector<8x32xf32> -> vector<8x32xf32>
    %c0_7 = arith.constant 0 : index
    %c0_8 = arith.constant 0 : index
    %6 = vector.load %arg5[%c0_7, %c0_8] : memref<1x32xf32, #tpu.memory_space<vmem>>, vector<1x32xf32>
    %7 = vector.broadcast %6 : vector<1x32xf32> to vector<8x32xf32>
    %8 = arith.addf %5, %7 : vector<8x32xf32>
    %9 = arith.truncf %3 : vector<8x32xf32> to vector<8x32xbf16>
    %c0_9 = arith.constant 0 : index
    %c0_10 = arith.constant 0 : index
    %c0_11 = arith.constant 0 : index
    %10 = vector.load %arg6[%c0_9, %c0_10, %c0_11] : memref<1x8x32xbf16, #tpu.memory_space<vmem>>, vector<1x8x32xbf16>
    %11 = vector.shape_cast %10 : vector<1x8x32xbf16> to vector<8x32xbf16>
    %12 = vector.shape_cast %9 : vector<8x32xbf16> to vector<1x8x32xbf16>
    tpu.vector_store %arg6[%c0_9, %c0_10, %c0_11], %12 {strides = array<i32>} : memref<1x8x32xbf16, #tpu.memory_space<vmem>>, vector<1x8x32xbf16>,
    %13 = arith.truncf %8 : vector<8x32xf32> to vector<8x32xbf16>
    %c0_12 = arith.constant 0 : index
    %c0_13 = arith.constant 0 : index
    %c0_14 = arith.constant 0 : index
    %14 = vector.load %arg7[%c0_12, %c0_13, %c0_14] : memref<1x8x32xbf16, #tpu.memory_space<vmem>>, vector<1x8x32xbf16>
    %15 = vector.shape_cast %14 : vector<1x8x32xbf16> to vector<8x32xbf16>
    %16 = vector.shape_cast %13 : vector<8x32xbf16> to vector<1x8x32xbf16>
    tpu.vector_store %arg7[%c0_12, %c0_13, %c0_14], %16 {strides = array<i32>} : memref<1x8x32xbf16, #tpu.memory_space<vmem>>, vector<1x8x32xbf16>,
    return
  }
  func.func @transform_0(%arg0: i32, %arg1: i32) -> (i32, i32, i32) {
    %c0_i32 = arith.constant 0 : i32
    %c0_i32_0 = arith.constant 0 : i32
    return %arg0, %arg1, %c0_i32 : i32, i32, i32
  }
  func.func @transform_1(%arg0: i32, %arg1: i32) -> (i32, i32) {
    %c0_i32 = arith.constant 0 : i32
    %c0_i32_0 = arith.constant 0 : i32
    %c0_i32_1 = arith.constant 0 : i32
    return %c0_i32, %c0_i32_0 : i32, i32
  }
  func.func @transform_2(%arg0: i32, %arg1: i32) -> (i32, i32) {
    %c0_i32 = arith.constant 0 : i32
    %c0_i32_0 = arith.constant 0 : i32
    %c0_i32_1 = arith.constant 0 : i32
    return %c0_i32, %c0_i32_0 : i32, i32
  }
  func.func @transform_3(%arg0: i32, %arg1: i32) -> (i32, i32) {
    %c0_i32 = arith.constant 0 : i32
    %c0_i32_0 = arith.constant 0 : i32
    %c0_i32_1 = arith.constant 0 : i32
    return %c0_i32, %c0_i32_0 : i32, i32
  }
  func.func @transform_4(%arg0: i32, %arg1: i32) -> (i32, i32, i32) {
    %c0_i32 = arith.constant 0 : i32
    %c0_i32_0 = arith.constant 0 : i32
    return %arg0, %arg1, %c0_i32 : i32, i32, i32
  }
  func.func @transform_5(%arg0: i32, %arg1: i32) -> (i32, i32, i32) {
    %c0_i32 = arith.constant 0 : i32
    %c0_i32_0 = arith.constant 0 : i32
    return %arg0, %arg1, %c0_i32 : i32, i32, i32
  }
}

</mosaic_0001>

<bundles_post_ra>
// kernel: tpu_custom_call.1
= control target key start
LH: loop header
LB: loop body
LE: loop exit
PB: predicated region body
PF: predicated region fallthrough
CT: control target
= control target key end

     0   :  { %11 = vsyncpa [#allocation3], 0  ;;  %s1105_s0 = inlined_call_operand.hbm [shape: bf16[2,8,32], index: 0, kind: input, shape index: {}]   ;;  %s1106_s1 = inlined_call_operand.hbm [shape: bf16[32,32], index: 1, kind: input, shape index: {}]   ;;  %s1107_s2 = inlined_call_operand.hbm [shape: bf16[32,32], index: 2, kind: input, shape index: {}]   ;;  %s1108_s3 = inlined_call_operand.vmem [shape: f32[1,32], index: 3, kind: input, shape index: {}]   ;;  %s1109_s4 = inlined_call_operand.hbm [shape: bf16[2,8,32], index: 4, kind: output, shape index: {0}]   ;;  %s1110_s5 = inlined_call_operand.hbm [shape: bf16[2,8,32], index: 5, kind: output, shape index: {1}]  }
   0x1   :  { %13 = vsyncpa [#allocation3 + $0x1], 0 }
   0x2   :  { %14 = vsyncpa [#allocation6], 0 }
   0x3   :  { %15 = vsyncpa [#allocation4], 0 }
   0x4   :  { %17 = vsyncpa [#allocation4 + $0x1], 0 }
   0x5   :  { %18 = vsyncpa [#allocation10], 0 }
   0x6   :  { %20 = vsyncpa [#allocation10 + $0x1], 0  ;;  %s925_s18 = smov 0   ;;  %s927_s19 = smov 0  }
   0x7   :  { %s929_s20 = smov 0   ;;  %s931_s21 = smov 0  }
   0x8   :  { %s933_s22 = smov 0   ;;  %s935_s23 = smov 0  }
   0x9 LB: > { %s548_s24 = sadd.s32 4294967295, %s889_s23   ;;  %p550_p0 = scmp.ge.s32.totalorder %s889_s23, 1  ;;  %s889_s23 = sphi %s935_s23, %s26_s23   ;;  %s885_s22 = sphi %s933_s22, %s1120_s22   ;;  %s881_s21 = sphi %s931_s21, %s1119_s21   ;;  %s877_s20 = sphi %s929_s20, %s1118_s20   ;;  %s873_s19 = sphi %s927_s19, %s1117_s19   ;;  %s869_s18 = sphi %s925_s18, %s1116_s18  }
   0xa   : > { %p959_p1 = scmp.eq.s32.totalorder %s548_s24, 0  ;;  %p190_p2 = scmp.lt.s32.totalorder %s889_s23, 3 }
   0xb   : > { %s201_s28 = sshll.u32 %s1106_s1, 4  ;;  %s891_s30 = smov [#allocation5]   ;;  %s202_s28 = int_to_ptr.hbm [resolvable:$true] %s201_s28 }
   0xc   : > { %p967_p3 = pnand %p550_p0, %p190_p2  ;;  %s203_s6 = sshll.u32 %s891_s30, 4  ;;  %s204_s6 = int_to_ptr.vmem [resolvable:$true] %s203_s6 }
   0xd   : > { %p553_p6 = scmp.ge.s32.totalorder %s889_s23, 2  ;;  %s215_s9 = sshll.u32 %s1107_s2, 4  ;;  %s216_s9 = int_to_ptr.hbm [resolvable:$true] %s215_s9 }
   0xe   : > { %p604_p4 = pneg %p967_p3  ;;  %s892_s10 = smov 64  }
   0xf   : > { %s893_s11 = smov 4   ;;  %s894_s12 = smov [#allocation7]  }
  0x10   : > { %p605_p5 = pnand %p604_p4, %p959_p1  ;;  %s217_s13 = sshll.u32 %s894_s12, 4  ;;  %s218_s13 = int_to_ptr.vmem [resolvable:$true] %s217_s13 }
  0x11   : > { %s38_s14 = sadd.s32 1, %s885_s22  ;;  %s549_s15 = sadd.s32 4294967294, %s889_s23  }
  0x12   : > { %607 = dma.hbm_to_vmem [thread:$0]  (!%p605_p5), %s202_s28, 256, %s204_s6, [#allocation6], %s892_s10, %s892_s10, %s893_s11  }
  0x13   : > { %610 = dma.hbm_to_vmem [thread:$0]  (!%p605_p5), %s216_s9, 256, %s218_s13, [#allocation6], %s892_s10, %s892_s10, %s893_s11  }
  0x14   : > { %p40_p7 = scmp.ge.s32.totalorder %s38_s14, 2  ;;  %s47_s16 = sadd.s32 1, %s877_s20 }
  0x15   : > { %p54_p8 = scmp.ne.s32.totalorder %s877_s20, %s873_s19  ;;  %p55_p9 = scmp.eq.s32.totalorder %s889_s23, 0 }
  0x16   : > { %s1122_s14 = smov (%p40_p7, %s38_s14), 0  ;;  %p60_p10 = scmp.ne.s32.totalorder %s873_s19, %s869_s18 }
  0x17   : > { %s42_s17 = ssub.s32 %s885_s22, %s1122_s14  ;;  %p149_p11 = scmp.eq.s32.totalorder %s548_s24, 1 }
  0x18   : > { %p45_p12 = scmp.eq.s32.totalorder %s42_s17, 0  ;;  %p995_p13 = por %p959_p1, %p60_p10 }
  0x19   : > { %p999_p0 = por %p149_p11, %p54_p8  ;;  %p155_p2 = scmp.eq.s32.totalorder %s549_s15, 1 }
  0x1a   : > { %s1004_s28 = scalar_select %p45_p12, %s877_s20, %s47_s16  }
  0x1b   : > { %p56_p4 = por %p55_p9, %p54_p8  ;;  %p1006_p5 = por %p155_p2, %p60_p10 }
  0x1c   : > { %s234_s6 = sand.u32 1, %s877_s20   ;;  %s555_s24 = sshll.u32 %s885_s22, 2 }
  0x1d   : > { %p624_p7 = scmp.lt.s32.totalorder %s889_s23, 2  ;;  %s554_s7 = sshll.u32 %s234_s6, 2 }
  0x1e   : > { %s243_s10 = scalar_lea.hbm %s1105_s0, %s555_s24  ;;  %s238_s12 = scalar_lea.vmem [#allocation2], %s554_s7 }
  0x1f   : > { %s245_s11 = sshll.u32 %s243_s10, 4  ;;  %s247_s13 = sshll.u32 %s238_s12, 4  ;;  %s246_s11 = int_to_ptr.hbm [resolvable:$true] %s245_s11  ;;  %s248_s13 = int_to_ptr.vmem [resolvable:$true] %s247_s13 }
  0x20   : > { %p612_p11 = pnand %p624_p7, %p56_p4  ;;  %s235_s15 = scalar_lea.sflag [#allocation3], %s234_s6 }
  0x21   : > { %256 = sbr.rel (%p967_p3) target bundleno = 192 (0xc0), region = 36  ;;  %s1019_s16 = sand.u32 (!%p967_p3), 1, %s873_s19  }
  0x22   : > { %614 = dma.hbm_to_vmem [thread:$0]  (!%p612_p11), %s246_s11, 64, %s248_s13, %s235_s15  }
  0x23   : > { %s1022_s17 = sshll.u32 (!%p967_p3), %s1019_s16, 2  ;;  %s259_s24 = scalar_lea.sflag (!%p967_p3), [#allocation3], %s1019_s16 }
  0x24   : > { %s262_s7 = scalar_lea.vmem (!%p967_p3), [#allocation2], %s1022_s17 }
  0x26   : > { %852 = dma.done.wait (%p995_p13), %s259_s24, 64  }
  0x27   : > { %854 = vsyncadd (%p995_p13), %s259_s24, 4294967232 }
  0x28   : > { %856 = dma.done.wait (%p959_p1), [#allocation6], 512  }
  0x29   : > { %858 = vsyncadd (%p959_p1), [#allocation6], 4294966784  ;;  %v587_v0 = vld [vmem:[#allocation5 + $0x8] sm:$0xff]  ;;  %v589_v1 = vld [vmem:[#allocation7 + $0x8] sm:$0xff]  ;;  %vm323_vm0 = vcmask 261120   ;;  %s582_s29 = sshll.u32 %s881_s21, 2 }
  0x2a   : > { %333 = vmatpush.bf16.msra.mxu0 %v587_v0  ;;  %366 = vmatpush.bf16.msra.mxu1 %v589_v1  ;;  %v586_v2 = vld [vmem:[#allocation5] sm:$0xff]  ;;  %v588_v3 = vld [vmem:[#allocation7] sm:$0xff]  ;;  %v306_v4 = vld [vmem:[%s262_s7] sm:$0xf]  ;;  %s395_s25 = scalar_lea.hbm %s1109_s4, %s582_s29  ;;  %s410_s12 = scalar_lea.hbm %s1110_s5, %s582_s29  ;;  %vm374_vm1 = vcmask 257024  }
  0x2b   : > { %v680_v5 = vld [vmem:[%s1108_s3] ss:$0 sm:$0xff]  ;;  %s297_s13 = scalar_lea.vmem [#allocation8], %s1022_s17  ;;  %s399_s24 = sshll.u32 %s395_s25, 4  ;;  %s400_s24 = int_to_ptr.hbm [resolvable:$true] %s399_s24 }
  0x2c   : > { %s1045_s15 = sshll.u32 %s297_s13, 4  ;;  %s304_s21 = scalar_lea.vmem [#allocation9], %s1022_s17  ;;  %s398_s15 = int_to_ptr.vmem [resolvable:$true] %s1045_s15 }
  0x2d   : > { %s1048_s7 = sshll.u32 %s304_s21, 4  ;;  %s414_s26 = sshll.u32 %s410_s12, 4  ;;  %s413_s7 = int_to_ptr.vmem [resolvable:$true] %s1048_s7  ;;  %s1053_s26 = int_to_ptr.hbm [resolvable:$true] %s414_s26 }
  0x2e   : > { %334 = vmatpush.bf16.msra.mxu0 %v586_v2  ;;  %367 = vmatpush.bf16.msra.mxu1 %v588_v3  ;;  %s379_s29 = scalar_lea.sflag [#allocation4], %s1019_s16  ;;  %s785_s6 = sshra.s32 %s400_s24, 4  ;;  %s786_s6 = int_to_ptr.hbm [resolvable:$true] %s785_s6 }
  0x2f   : > { %s787_s25 = scalar_lea.hbm %s786_s6, 4  ;;  %s791_s9 = scalar_lea.hbm %s1109_s4, 8 }
  0x30   : > { %p788_p1 = scmp.ne.s32.totalorder %s786_s6, %s787_s25  ;;  %p792_p9 = scmp.lt.s32.totalorder %s786_s6, %s1109_s4 }
  0x31   : > { %570 = vmatmul.msk.bf16.vlgmr.msra.gmra.mxu0 %vm323_vm0, %v306_v4  ;;  %579 = vmatmul.msk.bf16.vlgmr.msra.gmra.mxu1 %vm323_vm0, %v306_v4  ;;  %p793_p10 = scmp.lt.s32.totalorder %s791_s9, %s787_s25 }
  0x32   : > { %p789_p3 = pnand %p788_p1, %p999_p0 }
  0x33   : > { %p794_p12 = por %p793_p10, %p792_p9 }
  0x34   : > { %p790_p8 = pneg %p789_p3 }
  0x36   : > { %p795_p13 = pnand %p794_p12, %p790_p8 }
  0xae   : > { %v336_v6 = vpop.f32.mrf.mxu0  ;;  %v369_v7 = vpop.f32.mrf.mxu1 }
  0xaf   : > { %v373_v8 = vpack.c.bf16 %v336_v6, %v336_v6  ;;  %v370_v9 = vadd.f32 %v680_v5, %v369_v7 }
  0xb1   : > { %v376_v10 = vpack.c.bf16 %v370_v9, %v370_v9  ;;  %375 = vst.msk [vmem:[%s297_s13] sm:$0xf] %vm374_vm1, %v373_v8 }
  0xb2   : > { %798 = shalt.err (!%p795_p13)
}
  0xb3   : > { %600 = dma.vmem_to_hbm [thread:$0]  (%p999_p0), %s398_s15, 64, %s400_s24, %s379_s29   ;;  %377 = vst.msk [vmem:[%s304_s21] sm:$0xf] %vm374_vm1, %v376_v10 }
  0xb4   : > { %s384_s12 = scalar_lea.sflag [#allocation10], %s1019_s16  ;;  %s813_s13 = sshra.s32 %s1053_s26, 4  ;;  %s814_s13 = int_to_ptr.hbm [resolvable:$true] %s813_s13 }
  0xb5   : > { %s815_s17 = scalar_lea.hbm %s814_s13, 4  ;;  %s819_s8 = scalar_lea.hbm %s1110_s5, 8 }
  0xb6   : > { %p816_p2 = scmp.ne.s32.totalorder %s814_s13, %s815_s17  ;;  %p820_p11 = scmp.lt.s32.totalorder %s814_s13, %s1110_s5 }
  0xb7   : > { %p821_p1 = scmp.lt.s32.totalorder %s819_s8, %s815_s17 }
  0xb8   : > { %p817_p4 = pnand %p816_p2, %p999_p0 }
  0xb9   : > { %p822_p3 = por %p821_p1, %p820_p11 }
  0xba   : > { %p818_p7 = pneg %p817_p4 }
  0xbc   : > { %p823_p8 = pnand %p822_p3, %p818_p7 }
  0xbe   : > { %826 = shalt.err (!%p823_p8)
}
  0xbf   : > { %601 = dma.vmem_to_hbm [thread:$0]  (%p999_p0), %s413_s7, 64, %s1053_s26, %s384_s12   ;;  %v338_v11 = vpop.f32.mrf.mxu0  ;;  %v371_v12 = vpop.f32.mrf.mxu1 }
  0xc0 PF: > { %s426_s16 = sand.u32 1, %s869_s18   ;;  %p616_p9 = pnand %p553_p6, %p1006_p5 }
  0xc1   : > { %s427_s15 = scalar_lea.sflag [#allocation4], %s426_s16 }
  0xc2   : > { %p617_p10 = pneg %p616_p9 }
  0xc4   : > { %860 = dma.done.wait (%p617_p10), %s427_s15, 64  }
  0xc5   : > { %862 = vsyncadd (%p617_p10), %s427_s15, 4294967232  ;;  %s437_s24 = scalar_lea.sflag [#allocation10], %s426_s16 }
  0xc6   : > { %864 = dma.done.wait (%p617_p10), %s437_s24, 64  }
  0xc7   : > { %866 = vsyncadd (%p617_p10), %s437_s24, 4294967232  ;;  %s26_s23 = sadd.s32 1, %s889_s23   ;;  %s1116_s18 = smov %s873_s19 }
  0xc8   : > { %p23_p0 = scmp.ge.s32.totalorder %s26_s23, 4   ;;  %s1117_s19 = smov %s877_s20 }
  0xc9   : > { %s1118_s20 = smov %s1004_s28  ;;  %s1119_s21 = smov %s885_s22 }
  0xca   : > { %s1120_s22 = smov %s1122_s14  ;;  %25 = sbr.rel (!%p23_p0) target bundleno = 9 (0x9), region = 106 }
  0xcf   :  { %443 = vsyncpa [#allocation3], 1 }
  0xd0   :  { %445 = vsyncpa [#allocation3 + $0x1], 1 }
  0xd1   :  { %446 = vsyncpa [#allocation6], 1 }
  0xd2   :  { %447 = vsyncpa [#allocation4], 1 }
  0xd3   :  { %449 = vsyncpa [#allocation4 + $0x1], 1 }
  0xd4   :  { %450 = vsyncpa [#allocation10], 1 }
  0xd5   :  { %452 = vsyncpa [#allocation10 + $0x1], 1 }

</bundles_post_ra>
